<compile_context>
chip_gen: v7x
topology: tpu7x:2x2x1
jax: 0.10.0
libtpu: 0.0.40
codegen_flags: <defaults>
</compile_context>

<pallas_src>
import jax
import jax.numpy as jnp
from jax.experimental import pallas as pl
from jax.experimental.pallas import tpu as pltpu


# ----------------------------------------------------------------------------
# Fused kernel
# ----------------------------------------------------------------------------
def _policy_head_kernel(x_ref, p_ref, dw_ref, db_ref, o_ref):
    """Fused 1x1-conv + train-mode BatchNorm + leaky_relu + flatten + Linear
    + softmax.

    x_ref:  (B, C_in, HW)       f32, VMEM  (free reshape of the NCHW input)
    p_ref:  (C_out, C_in + 2)   f32, SMEM  [:, :C_in]=conv_w, [:, C_in]=gamma,
                                           [:, C_in+1]=beta
    dw_ref: (C_out, HW, A_pad)  bf16, VMEM (dense weight, (c,h,w)-major rows)
    db_ref: (1, A_pad)          f32, VMEM  (dense bias, padded cols = -1e30)
    o_ref:  (B, A_pad)          f32        (softmax probs, padded cols = 0)
    """
    b_sz, c_in, hw = x_ref.shape
    c_out = dw_ref.shape[0]
    inv_n = 1.0 / float(b_sz * hw)

    acc = jnp.zeros(o_ref.shape, jnp.float32)           # (B, A_pad) f32

    for c in range(c_out):
        # --- 1x1 conv, output channel c: C_in scalar-broadcast FMAs (VPU). ---
        # Conv bias omitted: train-mode BN subtracts the per-channel batch
        # mean, which cancels a per-channel constant exactly.
        y = p_ref[c, 0] * x_ref[:, 0, :]
        for ci in range(1, c_in):
            y = y + p_ref[c, ci] * x_ref[:, ci, :]       # (B, HW) f32

        # --- BatchNorm2d (training mode, biased batch stats over (B, HW)). ---
        # Single pass: var = E[y^2] - mu^2, clamped at 0 against cancellation.
        s1 = jnp.sum(jnp.sum(y, axis=1, keepdims=True), axis=0, keepdims=True)
        s2 = jnp.sum(jnp.sum(y * y, axis=1, keepdims=True), axis=0,
                     keepdims=True)
        mu = s1 * inv_n                                  # (1, 1)
        var = jnp.maximum(s2 * inv_n - mu * mu, 0.0)     # (1, 1)
        scale = p_ref[c, c_in] * jax.lax.rsqrt(var + 1e-5)      # gamma/sqrt(v+e)
        shift = p_ref[c, c_in + 1] - mu * scale                  # beta - mu*scale
        yhat = y * scale + shift

        # --- leaky_relu (negative_slope = 0.01). ---
        act = jnp.where(yhat > 0, yhat, 0.01 * yhat)     # (B, HW) f32

        # --- Dense contribution of channel c (MXU, bf16 operands, f32 acc). --
        # dw_ref[c] rows are indexed by the (h, w) offset and columns by the
        # action, so the x.view(-1, mix_channels) flatten is folded into this
        # per-channel accumulation -- no in-kernel relayout / scratch needed.
        acc = acc + jnp.dot(act.astype(jnp.bfloat16), dw_ref[c],
                            preferred_element_type=jnp.float32)

    # --- Bias + softmax (f32). Padded action columns: bias -1e30 -> prob 0. --
    logits = acc + db_ref[...]
    m = jnp.max(logits, axis=1, keepdims=True)
    e = jnp.exp(logits - m)
    o_ref[...] = e / jnp.sum(e, axis=1, keepdims=True)


# ----------------------------------------------------------------------------
# Wrapper
# ----------------------------------------------------------------------------
def policy_head_forward(x_nchw, params):
    """Forward pass equivalent to PolicyHead.forward (module in training mode,
    i.e. BatchNorm normalizes with batch statistics)."""
    B, c_in, H, W = x_nchw.shape
    A, mix = params["dense_w"].shape
    HW = H * W
    c_out = mix // HW
    A_pad = pl.cdiv(A, 128) * 128               # lane-dense dense/softmax output

    # Free reshape (no HBM transpose): NCHW -> (B, C_in, H*W).
    x3 = x_nchw.reshape(B, c_in, HW).astype(jnp.float32)

    # Pack conv weight + BN affine into one tiny SMEM-resident parameter block.
    # conv bias intentionally not passed: cancelled by train-mode BN.
    small = jnp.concatenate(
        [params["conv_w"].reshape(c_out, c_in),
         params["bn_gamma"].reshape(c_out, 1),
         params["bn_beta"].reshape(c_out, 1)], axis=1).astype(jnp.float32)

    # Dense weight -> (C_out, HW, A_pad) bf16 so the kernel contracts each
    # channel's (B, HW) activation against a natural (HW, A_pad) tile.  This
    # is a small, weight-only relayout; the big per-call activation transpose
    # of the previous version is gone.
    dw = params["dense_w"].reshape(A, c_out, HW).transpose(1, 2, 0)  # (C_out, HW, A)
    db = params["dense_b"].reshape(1, A).astype(jnp.float32)
    if A_pad != A:
        dw = jnp.pad(dw, ((0, 0), (0, 0), (0, A_pad - A)))
        db = jnp.pad(db, ((0, 0), (0, A_pad - A)), constant_values=-1e30)
    dw = dw.astype(jnp.bfloat16)

    cost = pl.CostEstimate(
        flops=int(2 * B * HW * c_in * c_out          # 1x1 conv
                  + 10 * c_out * B * HW              # BN + leaky_relu
                  + 2 * B * c_out * HW * A_pad       # dense
                  + 4 * B * A_pad),                  # softmax
        transcendentals=int(B * A_pad + c_out),
        bytes_accessed=int(x3.size * 4 + small.size * 4 + dw.size * 2
                           + db.size * 4 + B * A_pad * 4),
    )

    out = pl.pallas_call(
        _policy_head_kernel,
        out_shape=jax.ShapeDtypeStruct((B, A_pad), jnp.float32),
        in_specs=[
            pl.BlockSpec(memory_space=pltpu.MemorySpace.VMEM),   # x (B,C_in,HW)
            pl.BlockSpec(memory_space=pltpu.MemorySpace.SMEM),   # conv_w|gamma|beta
            pl.BlockSpec(memory_space=pltpu.MemorySpace.VMEM),   # dense weight bf16
            pl.BlockSpec(memory_space=pltpu.MemorySpace.VMEM),   # dense bias
        ],
        out_specs=pl.BlockSpec(memory_space=pltpu.MemorySpace.VMEM),
        cost_estimate=cost,
        # TODO(synk): if B*H*W scales up, tile the HW axis on a grid (sum/sumsq
        # BN accumulators), mark the tile axis "parallel" for v7x's two
        # TensorCores, keep resident weight specs single-buffered
        # (pipeline_mode=pl.Buffered(1)) and set vmem_limit_bytes for v7x's
        # 64 MiB VMEM.
    )(x3, small, dw, db)

    return out[:, :A]


# ----------------------------------------------------------------------------
# Main
# ----------------------------------------------------------------------------
if __name__ == "__main__":
    # Small shapes consistent with the module.
    B, C_IN, H, W = 2, 4, 16, 16
    C_OUT = 2
    NUM_ACTIONS = 64
    MIX = C_OUT * H * W  # 512

    key = jax.random.PRNGKey(0)
    k_x, k_cw, k_cb, k_g, k_bt, k_dw, k_db = jax.random.split(key, 7)

    x = jax.random.normal(k_x, (B, C_IN, H, W), dtype=jnp.float32)

    params = {
        # conv: (out_channels, in_channels, 1, 1) + bias (out_channels,)
        # (bias kept for interface parity; mathematically cancelled by
        #  train-mode BatchNorm, so the kernel does not need it)
        "conv_w": 0.1 * jax.random.normal(k_cw, (C_OUT, C_IN, 1, 1), dtype=jnp.float32),
        "conv_b": 0.1 * jax.random.normal(k_cb, (C_OUT,), dtype=jnp.float32),
        # batch norm affine params
        "bn_gamma": 1.0 + 0.05 * jax.random.normal(k_g, (C_OUT,), dtype=jnp.float32),
        "bn_beta": 0.05 * jax.random.normal(k_bt, (C_OUT,), dtype=jnp.float32),
        # dense: (num_actions, mix_channels) + bias (num_actions,)
        "dense_w": 0.05 * jax.random.normal(k_dw, (NUM_ACTIONS, MIX), dtype=jnp.float32),
        "dense_b": 0.05 * jax.random.normal(k_db, (NUM_ACTIONS,), dtype=jnp.float32),
    }

    policy = jax.jit(policy_head_forward)(x, params)
    policy = jax.block_until_ready(policy)

    # Pure-JAX f32 reference of the PyTorch forward (training-mode BN).
    def _ref(xr, p):
        w = p["conv_w"].reshape(C_OUT, C_IN)
        y = jnp.einsum("oc,bchw->bohw", w, xr) + p["conv_b"][None, :, None, None]
        mu = jnp.mean(y, axis=(0, 2, 3), keepdims=True)
        var = jnp.mean((y - mu) ** 2, axis=(0, 2, 3), keepdims=True)
        yhat = (y - mu) / jnp.sqrt(var + 1e-5) * p["bn_gamma"][None, :, None, None] \
               + p["bn_beta"][None, :, None, None]
        act = jnp.where(yhat > 0, yhat, 0.01 * yhat).reshape(-1, MIX)
        logits = act @ p["dense_w"].T + p["dense_b"]
        return jax.nn.softmax(logits, axis=1)

    ref = _ref(x, params)

    assert policy.shape == (B, NUM_ACTIONS)
    # softmax rows must sum to 1
    assert bool(jnp.allclose(jnp.sum(policy, axis=1), 1.0, atol=1e-5))
    # matches the f32 reference within bf16 dense-weight tolerance
    assert bool(jnp.allclose(policy, ref, atol=1e-2))

    print("KERNEL_OK")
</pallas_src>

<mosaic_0001>
module attributes {stable_mosaic.version = 11 : i64} {
  func.func @_policy_head_kernel(%arg0: memref<2x4x256xf32, #tpu.memory_space<vmem>>, %arg1: memref<2x6xf32, #tpu.memory_space<smem>>, %arg2: memref<2x256x128xbf16, #tpu.memory_space<vmem>>, %arg3: memref<1x128xf32, #tpu.memory_space<vmem>>, %arg4: memref<2x128xf32, #tpu.memory_space<vmem>>) attributes {dimension_semantics = [], scalar_prefetch = 0 : i64, scratch_operands = 0 : i64, tpu.core_type = #tpu.core_type<tc>} {
    %cst = arith.constant 0.000000e+00 : f32
    %0 = vector.broadcast %cst : f32 to vector<2x128xf32>
    %c0 = arith.constant 0 : index
    %c0_0 = arith.constant 0 : index
    %1 = memref.load %arg1[%c0, %c0_0] : memref<2x6xf32, #tpu.memory_space<smem>>
    %c0_1 = arith.constant 0 : index
    %c0_2 = arith.constant 0 : index
    %c0_3 = arith.constant 0 : index
    %2 = vector.load %arg0[%c0_1, %c0_2, %c0_3] : memref<2x4x256xf32, #tpu.memory_space<vmem>>, vector<2x1x256xf32>
    %3 = vector.shape_cast %2 : vector<2x1x256xf32> to vector<2x256xf32>
    %4 = vector.broadcast %1 : f32 to vector<2x256xf32>
    %5 = arith.mulf %4, %3 : vector<2x256xf32>
    %c0_4 = arith.constant 0 : index
    %c1 = arith.constant 1 : index
    %6 = memref.load %arg1[%c0_4, %c1] : memref<2x6xf32, #tpu.memory_space<smem>>
    %c0_5 = arith.constant 0 : index
    %c1_6 = arith.constant 1 : index
    %c0_7 = arith.constant 0 : index
    %7 = vector.load %arg0[%c0_5, %c1_6, %c0_7] : memref<2x4x256xf32, #tpu.memory_space<vmem>>, vector<2x1x256xf32>
    %8 = vector.shape_cast %7 : vector<2x1x256xf32> to vector<2x256xf32>
    %9 = vector.broadcast %6 : f32 to vector<2x256xf32>
    %10 = arith.mulf %9, %8 : vector<2x256xf32>
    %11 = arith.addf %5, %10 : vector<2x256xf32>
    %c0_8 = arith.constant 0 : index
    %c2 = arith.constant 2 : index
    %12 = memref.load %arg1[%c0_8, %c2] : memref<2x6xf32, #tpu.memory_space<smem>>
    %c0_9 = arith.constant 0 : index
    %c2_10 = arith.constant 2 : index
    %c0_11 = arith.constant 0 : index
    %13 = vector.load %arg0[%c0_9, %c2_10, %c0_11] : memref<2x4x256xf32, #tpu.memory_space<vmem>>, vector<2x1x256xf32>
    %14 = vector.shape_cast %13 : vector<2x1x256xf32> to vector<2x256xf32>
    %15 = vector.broadcast %12 : f32 to vector<2x256xf32>
    %16 = arith.mulf %15, %14 : vector<2x256xf32>
    %17 = arith.addf %11, %16 : vector<2x256xf32>
    %c0_12 = arith.constant 0 : index
    %c3 = arith.constant 3 : index
    %18 = memref.load %arg1[%c0_12, %c3] : memref<2x6xf32, #tpu.memory_space<smem>>
    %c0_13 = arith.constant 0 : index
    %c3_14 = arith.constant 3 : index
    %c0_15 = arith.constant 0 : index
    %19 = vector.load %arg0[%c0_13, %c3_14, %c0_15] : memref<2x4x256xf32, #tpu.memory_space<vmem>>, vector<2x1x256xf32>
    %20 = vector.shape_cast %19 : vector<2x1x256xf32> to vector<2x256xf32>
    %21 = vector.broadcast %18 : f32 to vector<2x256xf32>
    %22 = arith.mulf %21, %20 : vector<2x256xf32>
    %23 = arith.addf %17, %22 : vector<2x256xf32>
    %cst_16 = arith.constant dense<0.000000e+00> : vector<2xf32>
    %24 = vector.multi_reduction <add>, %23, %cst_16 [1] : vector<2x256xf32> to vector<2xf32>
    %25 = vector.shape_cast %24 : vector<2xf32> to vector<2x1xf32>
    %cst_17 = arith.constant dense<0.000000e+00> : vector<1xf32>
    %26 = vector.multi_reduction <add>, %25, %cst_17 [0] : vector<2x1xf32> to vector<1xf32>
    %27 = vector.shape_cast %26 : vector<1xf32> to vector<1x1xf32>
    %28 = arith.mulf %23, %23 : vector<2x256xf32>
    %cst_18 = arith.constant dense<0.000000e+00> : vector<2xf32>
    %29 = vector.multi_reduction <add>, %28, %cst_18 [1] : vector<2x256xf32> to vector<2xf32>
    %30 = vector.shape_cast %29 : vector<2xf32> to vector<2x1xf32>
    %cst_19 = arith.constant dense<0.000000e+00> : vector<1xf32>
    %31 = vector.multi_reduction <add>, %30, %cst_19 [0] : vector<2x1xf32> to vector<1xf32>
    %32 = vector.shape_cast %31 : vector<1xf32> to vector<1x1xf32>
    %cst_20 = arith.constant 0.001953125 : f32
    %33 = vector.broadcast %cst_20 : f32 to vector<1x1xf32>
    %34 = arith.mulf %27, %33 : vector<1x1xf32>
    %cst_21 = arith.constant 0.001953125 : f32
    %35 = vector.broadcast %cst_21 : f32 to vector<1x1xf32>
    %36 = arith.mulf %32, %35 : vector<1x1xf32>
    %37 = arith.mulf %34, %34 : vector<1x1xf32>
    %38 = arith.subf %36, %37 : vector<1x1xf32>
    %cst_22 = arith.constant 0.000000e+00 : f32
    %39 = vector.broadcast %cst_22 : f32 to vector<1x1xf32>
    %40 = arith.maximumf %38, %39 : vector<1x1xf32>
    %c0_23 = arith.constant 0 : index
    %c4 = arith.constant 4 : index
    %41 = memref.load %arg1[%c0_23, %c4] : memref<2x6xf32, #tpu.memory_space<smem>>
    %cst_24 = arith.constant 9.99999974E-6 : f32
    %42 = vector.broadcast %cst_24 : f32 to vector<1x1xf32>
    %43 = arith.addf %40, %42 : vector<1x1xf32>
    %44 = math.rsqrt %43 : vector<1x1xf32>
    %45 = vector.broadcast %41 : f32 to vector<1x1xf32>
    %46 = arith.mulf %45, %44 : vector<1x1xf32>
    %c0_25 = arith.constant 0 : index
    %c5 = arith.constant 5 : index
    %47 = memref.load %arg1[%c0_25, %c5] : memref<2x6xf32, #tpu.memory_space<smem>>
    %48 = arith.mulf %34, %46 : vector<1x1xf32>
    %49 = vector.broadcast %47 : f32 to vector<1x1xf32>
    %50 = arith.subf %49, %48 : vector<1x1xf32>
    %51 = vector.broadcast %46 : vector<1x1xf32> to vector<2x256xf32>
    %52 = arith.mulf %23, %51 : vector<2x256xf32>
    %53 = vector.broadcast %50 : vector<1x1xf32> to vector<2x256xf32>
    %54 = arith.addf %52, %53 : vector<2x256xf32>
    %cst_26 = arith.constant 0.000000e+00 : f32
    %55 = vector.broadcast %cst_26 : f32 to vector<2x256xf32>
    %56 = arith.cmpf ogt, %54, %55 : vector<2x256xf32>
    %cst_27 = arith.constant 0.00999999977 : f32
    %57 = vector.broadcast %cst_27 : f32 to vector<2x256xf32>
    %58 = arith.mulf %57, %54 : vector<2x256xf32>
    %59 = arith.select %56, %54, %58 : vector<2x256xi1>, vector<2x256xf32>
    %60 = arith.truncf %59 : vector<2x256xf32> to vector<2x256xbf16>
    %c0_28 = arith.constant 0 : index
    %c0_29 = arith.constant 0 : index
    %c0_30 = arith.constant 0 : index
    %61 = vector.load %arg2[%c0_28, %c0_29, %c0_30] : memref<2x256x128xbf16, #tpu.memory_space<vmem>>, vector<1x256x128xbf16>
    %62 = vector.shape_cast %61 : vector<1x256x128xbf16> to vector<256x128xbf16>
    %cst_31 = arith.constant dense<0.000000e+00> : vector<2x128xf32>
    %63 = tpu.matmul %60, %62, %cst_31 {dimension_numbers = #tpu.dot_dimension_numbers<[1], [0], [0], [1], [0, 0, 1, 1], [], []>} : vector<2x256xbf16>, vector<256x128xbf16>, vector<2x128xf32> -> vector<2x128xf32>
    %64 = arith.addf %0, %63 : vector<2x128xf32>
    %c1_32 = arith.constant 1 : index
    %c0_33 = arith.constant 0 : index
    %65 = memref.load %arg1[%c1_32, %c0_33] : memref<2x6xf32, #tpu.memory_space<smem>>
    %c0_34 = arith.constant 0 : index
    %c0_35 = arith.constant 0 : index
    %c0_36 = arith.constant 0 : index
    %66 = vector.load %arg0[%c0_34, %c0_35, %c0_36] : memref<2x4x256xf32, #tpu.memory_space<vmem>>, vector<2x1x256xf32>
    %67 = vector.shape_cast %66 : vector<2x1x256xf32> to vector<2x256xf32>
    %68 = vector.broadcast %65 : f32 to vector<2x256xf32>
    %69 = arith.mulf %68, %67 : vector<2x256xf32>
    %c1_37 = arith.constant 1 : index
    %c1_38 = arith.constant 1 : index
    %70 = memref.load %arg1[%c1_37, %c1_38] : memref<2x6xf32, #tpu.memory_space<smem>>
    %c0_39 = arith.constant 0 : index
    %c1_40 = arith.constant 1 : index
    %c0_41 = arith.constant 0 : index
    %71 = vector.load %arg0[%c0_39, %c1_40, %c0_41] : memref<2x4x256xf32, #tpu.memory_space<vmem>>, vector<2x1x256xf32>
    %72 = vector.shape_cast %71 : vector<2x1x256xf32> to vector<2x256xf32>
    %73 = vector.broadcast %70 : f32 to vector<2x256xf32>
    %74 = arith.mulf %73, %72 : vector<2x256xf32>
    %75 = arith.addf %69, %74 : vector<2x256xf32>
    %c1_42 = arith.constant 1 : index
    %c2_43 = arith.constant 2 : index
    %76 = memref.load %arg1[%c1_42, %c2_43] : memref<2x6xf32, #tpu.memory_space<smem>>
    %c0_44 = arith.constant 0 : index
    %c2_45 = arith.constant 2 : index
    %c0_46 = arith.constant 0 : index
    %77 = vector.load %arg0[%c0_44, %c2_45, %c0_46] : memref<2x4x256xf32, #tpu.memory_space<vmem>>, vector<2x1x256xf32>
    %78 = vector.shape_cast %77 : vector<2x1x256xf32> to vector<2x256xf32>
    %79 = vector.broadcast %76 : f32 to vector<2x256xf32>
    %80 = arith.mulf %79, %78 : vector<2x256xf32>
    %81 = arith.addf %75, %80 : vector<2x256xf32>
    %c1_47 = arith.constant 1 : index
    %c3_48 = arith.constant 3 : index
    %82 = memref.load %arg1[%c1_47, %c3_48] : memref<2x6xf32, #tpu.memory_space<smem>>
    %c0_49 = arith.constant 0 : index
    %c3_50 = arith.constant 3 : index
    %c0_51 = arith.constant 0 : index
    %83 = vector.load %arg0[%c0_49, %c3_50, %c0_51] : memref<2x4x256xf32, #tpu.memory_space<vmem>>, vector<2x1x256xf32>
    %84 = vector.shape_cast %83 : vector<2x1x256xf32> to vector<2x256xf32>
    %85 = vector.broadcast %82 : f32 to vector<2x256xf32>
    %86 = arith.mulf %85, %84 : vector<2x256xf32>
    %87 = arith.addf %81, %86 : vector<2x256xf32>
    %cst_52 = arith.constant dense<0.000000e+00> : vector<2xf32>
    %88 = vector.multi_reduction <add>, %87, %cst_52 [1] : vector<2x256xf32> to vector<2xf32>
    %89 = vector.shape_cast %88 : vector<2xf32> to vector<2x1xf32>
    %cst_53 = arith.constant dense<0.000000e+00> : vector<1xf32>
    %90 = vector.multi_reduction <add>, %89, %cst_53 [0] : vector<2x1xf32> to vector<1xf32>
    %91 = vector.shape_cast %90 : vector<1xf32> to vector<1x1xf32>
    %92 = arith.mulf %87, %87 : vector<2x256xf32>
    %cst_54 = arith.constant dense<0.000000e+00> : vector<2xf32>
    %93 = vector.multi_reduction <add>, %92, %cst_54 [1] : vector<2x256xf32> to vector<2xf32>
    %94 = vector.shape_cast %93 : vector<2xf32> to vector<2x1xf32>
    %cst_55 = arith.constant dense<0.000000e+00> : vector<1xf32>
    %95 = vector.multi_reduction <add>, %94, %cst_55 [0] : vector<2x1xf32> to vector<1xf32>
    %96 = vector.shape_cast %95 : vector<1xf32> to vector<1x1xf32>
    %cst_56 = arith.constant 0.001953125 : f32
    %97 = vector.broadcast %cst_56 : f32 to vector<1x1xf32>
    %98 = arith.mulf %91, %97 : vector<1x1xf32>
    %cst_57 = arith.constant 0.001953125 : f32
    %99 = vector.broadcast %cst_57 : f32 to vector<1x1xf32>
    %100 = arith.mulf %96, %99 : vector<1x1xf32>
    %101 = arith.mulf %98, %98 : vector<1x1xf32>
    %102 = arith.subf %100, %101 : vector<1x1xf32>
    %cst_58 = arith.constant 0.000000e+00 : f32
    %103 = vector.broadcast %cst_58 : f32 to vector<1x1xf32>
    %104 = arith.maximumf %102, %103 : vector<1x1xf32>
    %c1_59 = arith.constant 1 : index
    %c4_60 = arith.constant 4 : index
    %105 = memref.load %arg1[%c1_59, %c4_60] : memref<2x6xf32, #tpu.memory_space<smem>>
    %cst_61 = arith.constant 9.99999974E-6 : f32
    %106 = vector.broadcast %cst_61 : f32 to vector<1x1xf32>
    %107 = arith.addf %104, %106 : vector<1x1xf32>
    %108 = math.rsqrt %107 : vector<1x1xf32>
    %109 = vector.broadcast %105 : f32 to vector<1x1xf32>
    %110 = arith.mulf %109, %108 : vector<1x1xf32>
    %c1_62 = arith.constant 1 : index
    %c5_63 = arith.constant 5 : index
    %111 = memref.load %arg1[%c1_62, %c5_63] : memref<2x6xf32, #tpu.memory_space<smem>>
    %112 = arith.mulf %98, %110 : vector<1x1xf32>
    %113 = vector.broadcast %111 : f32 to vector<1x1xf32>
    %114 = arith.subf %113, %112 : vector<1x1xf32>
    %115 = vector.broadcast %110 : vector<1x1xf32> to vector<2x256xf32>
    %116 = arith.mulf %87, %115 : vector<2x256xf32>
    %117 = vector.broadcast %114 : vector<1x1xf32> to vector<2x256xf32>
    %118 = arith.addf %116, %117 : vector<2x256xf32>
    %cst_64 = arith.constant 0.000000e+00 : f32
    %119 = vector.broadcast %cst_64 : f32 to vector<2x256xf32>
    %120 = arith.cmpf ogt, %118, %119 : vector<2x256xf32>
    %cst_65 = arith.constant 0.00999999977 : f32
    %121 = vector.broadcast %cst_65 : f32 to vector<2x256xf32>
    %122 = arith.mulf %121, %118 : vector<2x256xf32>
    %123 = arith.select %120, %118, %122 : vector<2x256xi1>, vector<2x256xf32>
    %124 = arith.truncf %123 : vector<2x256xf32> to vector<2x256xbf16>
    %c1_66 = arith.constant 1 : index
    %c0_67 = arith.constant 0 : index
    %c0_68 = arith.constant 0 : index
    %125 = vector.load %arg2[%c1_66, %c0_67, %c0_68] : memref<2x256x128xbf16, #tpu.memory_space<vmem>>, vector<1x256x128xbf16>
    %126 = vector.shape_cast %125 : vector<1x256x128xbf16> to vector<256x128xbf16>
    %cst_69 = arith.constant dense<0.000000e+00> : vector<2x128xf32>
    %127 = tpu.matmul %124, %126, %cst_69 {dimension_numbers = #tpu.dot_dimension_numbers<[1], [0], [0], [1], [0, 0, 1, 1], [], []>} : vector<2x256xbf16>, vector<256x128xbf16>, vector<2x128xf32> -> vector<2x128xf32>
    %128 = arith.addf %64, %127 : vector<2x128xf32>
    %c0_70 = arith.constant 0 : index
    %c0_71 = arith.constant 0 : index
    %129 = vector.load %arg3[%c0_70, %c0_71] : memref<1x128xf32, #tpu.memory_space<vmem>>, vector<1x128xf32>
    %130 = vector.broadcast %129 : vector<1x128xf32> to vector<2x128xf32>
    %131 = arith.addf %128, %130 : vector<2x128xf32>
    %cst_72 = arith.constant dense<0xFF800000> : vector<2xf32>
    %132 = vector.multi_reduction <maximumf>, %131, %cst_72 [1] : vector<2x128xf32> to vector<2xf32>
    %133 = vector.shape_cast %132 : vector<2xf32> to vector<2x1xf32>
    %134 = vector.broadcast %133 : vector<2x1xf32> to vector<2x128xf32>
    %135 = arith.subf %131, %134 : vector<2x128xf32>
    %136 = math.exp %135 : vector<2x128xf32>
    %cst_73 = arith.constant dense<0.000000e+00> : vector<2xf32>
    %137 = vector.multi_reduction <add>, %136, %cst_73 [1] : vector<2x128xf32> to vector<2xf32>
    %138 = vector.shape_cast %137 : vector<2xf32> to vector<2x1xf32>
    %139 = vector.broadcast %138 : vector<2x1xf32> to vector<2x128xf32>
    %140 = arith.divf %136, %139 : vector<2x128xf32>
    %c0_74 = arith.constant 0 : index
    %c0_75 = arith.constant 0 : index
    %141 = vector.load %arg4[%c0_74, %c0_75] : memref<2x128xf32, #tpu.memory_space<vmem>>, vector<2x128xf32>
    tpu.vector_store %arg4[%c0_74, %c0_75], %140 {strides = array<i32>} : memref<2x128xf32, #tpu.memory_space<vmem>>, vector<2x128xf32>,
    return
  }
}

</mosaic_0001>

<bundles_post_ra>
// kernel: policy_head_forward.1
= control target key start
LH: loop header
LB: loop body
LE: loop exit
PB: predicated region body
PF: predicated region fallthrough
CT: control target
= control target key end

     0   :  { %9 = vsyncpa [#allocation4], 0  ;;  %s1187_s0 = inlined_call_operand.vmem [shape: f32[2,4,256], index: 0, kind: input, shape index: {}]   ;;  %s1188_s1 = inlined_call_operand.vmem [shape: f32[2,6], index: 1, kind: input, shape index: {}]   ;;  %s1189_s2 = inlined_call_operand.vmem [shape: bf16[2,256,128], index: 2, kind: input, shape index: {}]   ;;  %s1190_s3 = inlined_call_operand.vmem [shape: f32[1,128], index: 3, kind: input, shape index: {}]   ;;  %s1191_s4 = inlined_call_operand.hbm [shape: f32[2,128], index: 4, kind: output, shape index: {}]  }
   0x1   :  { %10 = vsyncpa [#allocation3], 0  ;;  %s19_s17 = sshll.u32 %s1188_s1, 4  ;;  %s20_s17 = int_to_ptr.vmem [resolvable:$true] %s19_s17 }
   0x2   :  { %s927_s18 = scalar_lea.vmem %s20_s17, 32  ;;  %p932_p1 = scmp.lt.s32.totalorder %s20_s17, %s20_s17 }
   0x3   :  { %p928_p0 = scmp.ne.s32.totalorder %s20_s17, %s927_s18  ;;  %p933_p2 = scmp.lt.s32.totalorder %s927_s18, %s927_s18 }
   0x5   :  { %p934_p3 = por %p933_p2, %p932_p1 }
   0x7   :  { %p935_p4 = pnand %p934_p3, %p928_p0 }
   0x9   :  { %938 = shalt.err (!%p935_p4)
}
   0xa   :  { %s965_s19 = smov [#allocation2]  }
   0xb   :  { %22 = dma.vmem_to_smem %s20_s17, 32, %s965_s19, [#allocation4]  }
   0xc   :  { %961 = dma.done.wait [#allocation4], 32  }
   0xd   :  { %962 = vsyncadd [#allocation4], 4294967264 }
   0xe   :  { %30 = sfence }
   0xf   :  { %s32_s20 = sld [smem:[#allocation2]]  ;;  %s758_s21 = sld [smem:[#allocation2 + $0x1]]  ;;  %v75_v0 = vlaneseq  ;;  %v33_v1 = vld [vmem:[%s1187_s0] ss:$4 sm:$0x3]  ;;  %vm96_vm0 = vcmask 1041408  }
  0x10   :  { %v757_v2 = vld [vmem:[%s1187_s0 + $0x8] ss:$4 sm:$0x3]  ;;  %v759_v3 = vld [vmem:[%s1187_s0 + $0x1] ss:$4 sm:$0x3] }
  0x11   :  { %s761_s27 = sld [smem:[#allocation2 + $0x2]]  ;;  %v760_v4 = vld [vmem:[%s1187_s0 + $0x9] ss:$4 sm:$0x3]  ;;  %s764_s30 = sld [smem:[#allocation2 + $0x3]]  ;;  %v1014_v7 = vshrl.u32 %v75_v0, 7 }
  0x12   :  { %v762_v5 = vld [vmem:[%s1187_s0 + $0x2] ss:$4 sm:$0x3]  ;;  %v763_v6 = vld [vmem:[%s1187_s0 + $0xa] ss:$4 sm:$0x3] }
  0x13   :  { %s1016_s9 = sld [smem:[#allocation2 + $0x80]]  ;;  %s1018_s10 = sld [smem:[#allocation2 + $0x81]]  ;;  %v765_v12 = vld [vmem:[%s1187_s0 + $0x3] ss:$4 sm:$0x3]  ;;  %vm426_vm3 = vcmask 1041409  }
  0x14   :  { %v766_v13 = vld [vmem:[%s1187_s0 + $0xb] ss:$4 sm:$0x3]  ;;  %v966_v14 = vmov 1966171168   ;;  %s771_s15 = sld [smem:[#allocation2 + $0x82]] }
  0x15   :  { %v36_v8 = vstv %s32_s20  ;;  %v44_v11 = vstv %s758_s21  ;;  %v73_v15 = vunpack.c.l.s4 %v966_v14  ;;  %s1026_s16 = sld [smem:[#allocation2 + $0x83]]  ;;  %s768_s1 = sld [smem:[#allocation2 + $0x5]] }
  0x16   :  { %v37_v9 = vmul.f32 %v36_v8, %v33_v1  ;;  %v38_v10 = vmul.f32 %v757_v2, %v36_v8  ;;  %v45_v16 = vmul.f32 %v759_v3, %v44_v11  ;;  %v46_v17 = vmul.f32 %v760_v4, %v44_v11  ;;  %s773_s24 = sld [smem:[#allocation2 + $0x84]]  ;;  %s774_s25 = sld [smem:[#allocation2 + $0x85]] }
  0x17   :  { %v54_v18 = vstv %s761_s27  ;;  %v74_v19 = vunpack.c.0.s8 %v73_v15  ;;  %v64_v24 = vstv %s764_s30  ;;  %s967_s28 = smov [#allocation5]  }
  0x18   :  { %v47_v20 = vadd.f32 %v45_v16, %v37_v9  ;;  %v48_v21 = vadd.f32 %v46_v17, %v38_v10  ;;  %v55_v22 = vmul.f32 %v762_v5, %v54_v18  ;;  %v56_v23 = vmul.f32 %v763_v6, %v54_v18  ;;  %s748_s29 = sshll.u32 %s967_s28, 4  ;;  %s749_s29 = int_to_ptr.vmem [resolvable:$true] %s748_s29 }
  0x19   :  { %v77_v25 = vsub.s32 %v74_v19, %v1014_v7  ;;  %v65_v28 = vmul.f32 %v765_v12, %v64_v24  ;;  %v66_v29 = vmul.f32 %v766_v13, %v64_v24  ;;  %v233_v30 = vstv %s1016_s9  ;;  %v888_v24 = vld [vmem:[%s1189_s2] sm:$0xff]   ;;  %p944_p6 = scmp.lt.s32.totalorder %s749_s29, %s749_s29 }
  0x1a   :  { %v57_v26 = vadd.f32 %v55_v22, %v47_v20  ;;  %v58_v27 = vadd.f32 %v56_v23, %v48_v21  ;;  %v237_v31 = vstv %s1018_s10  ;;  %v243_v32 = vstv %s771_s15  ;;  %v887_v23 = vld [vmem:[%s1189_s2 + $0x40] sm:$0xff]  }
  0x1b   :  { %v249_v33 = vstv %s1026_s16  ;;  %v234_v36 = vmul.f32 %v233_v30, %v33_v1  ;;  %v235_v37 = vmul.f32 %v757_v2, %v233_v30  ;;  %v238_v38 = vmul.f32 %v759_v3, %v237_v31  ;;  %862 = vmatprep.subr.bf16.mxu1 %v887_v23  ;;  %v894_v30 = vld [vmem:[%s1189_s2 + $0x50] sm:$0xff]  }
  0x1c   :  { %v1032_v34 = vadd.f32 %v65_v28, %v57_v26  ;;  %v1034_v35 = vadd.f32 %v66_v29, %v58_v27  ;;  %v239_v39 = vmul.f32 %v760_v4, %v237_v31  ;;  %v244_v40 = vmul.f32 %v762_v5, %v243_v32  ;;  %863 = vmatpush3.bf16.msra.mxu1 %v888_v24  ;;  %v890_v26 = vld [vmem:[%s1189_s2 + $0x48] sm:$0xff]   ;;  %v891_v27 = vld [vmem:[%s1189_s2 + $0x80] sm:$0xff]  }
  0x1d   :  { %v245_v41 = vmul.f32 %v763_v6, %v243_v32  ;;  %v240_v45 = vadd.f32 %v238_v38, %v234_v36  ;;  %v250_v47 = vmul.f32 %v765_v12, %v249_v33  ;;  %v251_v48 = vmul.f32 %v766_v13, %v249_v33  ;;  %v892_v28 = vld [vmem:[%s1189_s2 + $0x8] sm:$0xff]   ;;  %864 = vmatprep.subr.bf16.mxu1 %v890_v26  ;;  %v896_v32 = vld [vmem:[%s1189_s2 + $0x10] sm:$0xff]   ;;  %v898_v36 = vld [vmem:[%s1189_s2 + $0x58] sm:$0xff]  }
  0x1e   :  { %v71_v42 = vcombine.low %v1032_v34, %v1034_v35  ;;  %v109_v43 = vmul.f32 %v1032_v34, %v1032_v34  ;;  %v110_v44 = vmul.f32 %v1034_v35, %v1034_v35  ;;  %v241_v46 = vadd.f32 %v239_v39, %v235_v37  ;;  %v893_v29 = vld [vmem:[%s1189_s2 + $0xc8] sm:$0xff]   ;;  %v897_v33 = vld [vmem:[%s1189_s2 + $0xd0] sm:$0xff]   ;;  %v900_v38 = vld [vmem:[%s1189_s2 + $0x18] sm:$0xff]  }
  0x1f   :  { %v246_v51 = vadd.f32 %v244_v40, %v240_v45  ;;  %v895_v31 = vld [vmem:[%s1189_s2 + $0x88] sm:$0xff]   ;;  %v899_v37 = vld [vmem:[%s1189_s2 + $0x90] sm:$0xff]   ;;  %v901_v39 = vld [vmem:[%s1189_s2 + $0xd8] sm:$0xff]  }
  0x20   :  { %v78_v49 = vrot.slane %v71_v42, %v77_v25  ;;  %v113_v50 = vcombine.low %v109_v43, %v110_v44  ;;  %v247_v52 = vadd.f32 %v245_v41, %v241_v46  ;;  %865 = vmatpush3.bf16.msra.mxu1 %v892_v28  ;;  %v902_v40 = vld [vmem:[%s1189_s2 + $0x60] sm:$0xff]   ;;  %v903_v41 = vld [vmem:[%s1189_s2 + $0x98] sm:$0xff]   ;;  %v906_v44 = vld [vmem:[%s1189_s2 + $0x68] sm:$0xff]  }
  0x21   :  { %v1042_v56 = vadd.f32 %v250_v47, %v246_v51  ;;  %866 = vmatprep.subr.bf16.mxu1 %v894_v30  ;;  %v904_v42 = vld [vmem:[%s1189_s2 + $0x20] sm:$0xff]   ;;  %v908_v46 = vld [vmem:[%s1189_s2 + $0x28] sm:$0xff]   ;;  %v913_v51 = vld [vmem:[%s1189_s2 + $0xf0] sm:$0xff]  }
  0x22   :  { %v79_v53 = vcombine.high %v78_v49, %v78_v49  ;;  %v86_v54 = vrot.slane %v78_v49, %v77_v25  ;;  %v120_v55 = vrot.slane %v113_v50, %v77_v25  ;;  %v1044_v57 = vadd.f32 %v251_v48, %v247_v52  ;;  %v905_v43 = vld [vmem:[%s1189_s2 + $0xe0] sm:$0xff]   ;;  %v909_v47 = vld [vmem:[%s1189_s2 + $0xe8] sm:$0xff]   ;;  %v910_v48 = vld [vmem:[%s1189_s2 + $0x70] sm:$0xff]  }
  0x23   :  { %v293_v63 = vmul.f32 %v1042_v56, %v1042_v56  ;;  %v907_v45 = vld [vmem:[%s1189_s2 + $0xa0] sm:$0xff]   ;;  %v911_v49 = vld [vmem:[%s1189_s2 + $0xa8] sm:$0xff]   ;;  %v912_v50 = vld [vmem:[%s1189_s2 + $0x30] sm:$0xff]  }
  0x24   :  { %v93_v58 = vrot.slane %v79_v53, %v77_v25  ;;  %v97_v59 = vsel %vm96_vm0, %v86_v54, 0.0  ;;  %v121_v60 = vcombine.high %v120_v55, %v120_v55  ;;  %v128_v61 = vrot.slane %v120_v55, %v77_v25  ;;  %867 = vmatpush3.bf16.msra.mxu1 %v896_v32  ;;  %v914_v52 = vld [vmem:[%s1189_s2 + $0x78] sm:$0xff]   ;;  %v915_v53 = vld [vmem:[%s1189_s2 + $0xb0] sm:$0xff]  }
  0x25   :  { %v256_v62 = vcombine.low %v1042_v56, %v1044_v57  ;;  %v294_v0 = vmul.f32 %v1044_v57, %v1044_v57  ;;  %868 = vmatprep.subr.bf16.mxu1 %v898_v36  ;;  %v916_v54 = vld [vmem:[%s1189_s2 + $0x38] sm:$0xff]  }
  0x26   :  { %v98_v1 = vsel %vm96_vm0, %v93_v58, 0.0  ;;  %v135_v2 = vrot.slane %v121_v60, %v77_v25  ;;  %v138_v3 = vsel %vm96_vm0, %v128_v61, 0.0  ;;  %v917_v55 = vld [vmem:[%s1189_s2 + $0xf8] sm:$0xff]  }
  0x27   :  { %v99_v4 = vadd.f32 %v98_v1, %v97_v59  ;;  %v263_v5 = vrot.slane %v256_v62, %v77_v25  ;;  %v297_v6 = vcombine.low %v293_v63, %v294_v0  ;;  %v918_v58 = vld [vmem:[%s1189_s2 + $0xb8] sm:$0xff]  }
  0x28   :  { %v139_v8 = vsel %vm96_vm0, %v135_v2, 0.0  ;;  %869 = vmatpush3.bf16.msra.mxu1 %v900_v38 }
  0x29   :  { %100 = vadd.xlane.f32.xlu0 %v99_v4  ;;  %v140_v9 = vadd.f32 %v139_v8, %v138_v3  ;;  %v264_v10 = vcombine.high %v263_v5, %v263_v5  ;;  %v271_v11 = vrot.slane %v263_v5, %v77_v25  ;;  %v304_v12 = vrot.slane %v297_v6, %v77_v25 }
  0x2a   :  { %870 = vmatprep.subr.bf16.mxu1 %v902_v40 }
  0x2b   :  { %141 = vadd.xlane.f32.xlu1 %v140_v9  ;;  %v278_v13 = vrot.slane %v264_v10, %v77_v25  ;;  %v281_v14 = vsel %vm96_vm0, %v271_v11, 0.0  ;;  %v305_v15 = vcombine.high %v304_v12, %v304_v12  ;;  %v312_v16 = vrot.slane %v304_v12, %v77_v25 }
  0x2c   :  { %871 = vmatpush3.bf16.msra.mxu1 %v904_v42 }
  0x2d   :  { %v282_v17 = vsel %vm96_vm0, %v278_v13, 0.0  ;;  %v319_v18 = vrot.slane %v305_v15, %v77_v25  ;;  %v322_v19 = vsel %vm96_vm0, %v312_v16, 0.0  ;;  %v889_v25 = vld [vmem:[%s1189_s2 + $0xc0] sm:$0xff]   ;;  %872 = vmatprep.subr.bf16.mxu1 %v906_v44  ;;  %s767_s2 = sld [smem:[#allocation2 + $0x4]] }
  0x2e   :  { %v283_v20 = vadd.f32 %v282_v17, %v281_v14  ;;  %840 = vmatprep.subr.bf16.mxu0 %v889_v25 }
  0x2f   :  { %v323_v21 = vsel %vm96_vm0, %v319_v18, 0.0  ;;  %841 = vmatpush3.bf16.msra.mxu0 %v891_v27 }
  0x30   :  { %284 = vadd.xlane.f32.xlu0 %v283_v20  ;;  %v324_v22 = vadd.f32 %v323_v21, %v322_v19  ;;  %842 = vmatprep.subr.bf16.mxu0 %v893_v29 }
  0x31   :  { %873 = vmatpush3.bf16.msra.mxu1 %v908_v46 }
  0x32   :  { %325 = vadd.xlane.f32.xlu1 %v324_v22  ;;  %874 = vmatprep.subr.bf16.mxu1 %v910_v48 }
  0x33   :  { %843 = vmatpush3.bf16.msra.mxu0 %v895_v31  ;;  %v158_v42 = vstv %s767_s2 }
  0x34   :  { %844 = vmatprep.subr.bf16.mxu0 %v897_v33 }
  0x35   :  { %875 = vmatpush3.bf16.msra.mxu1 %v912_v50  ;;  %v342_v50 = vstv %s773_s24 }
  0x36   :  { %876 = vmatprep.subr.bf16.mxu1 %v914_v52 }
  0x37   :  { %845 = vmatpush3.bf16.msra.mxu0 %v899_v37 }
  0x38   :  { %846 = vmatprep.subr.bf16.mxu0 %v901_v39 }
  0x39   :  { %877 = vmatpush3.bf16.msra.mxu1 %v916_v54  ;;  %v178_v54 = vsub.s32 0, %v1014_v7 }
  0x3b   :  { %847 = vmatpush3.bf16.msra.mxu0 %v903_v41 }
  0x3c   :  { %848 = vmatprep.subr.bf16.mxu0 %v905_v43 }
  0x3f   :  { %849 = vmatpush3.bf16.msra.mxu0 %v907_v45  ;;  %v162_v45 = vstv %s768_s1 }
  0x40   :  { %850 = vmatprep.subr.bf16.mxu0 %v909_v47 }
  0x43   :  { %851 = vmatpush3.bf16.msra.mxu0 %v911_v49 }
  0x44   :  { %852 = vmatprep.subr.bf16.mxu0 %v913_v51 }
  0x47   :  { %853 = vmatpush3.bf16.msra.mxu0 %v915_v53 }
  0x48   :  { %854 = vmatprep.subr.bf16.mxu0 %v917_v55  ;;  %v182_v55 = vsub.s32 1, %v1014_v7 }
  0x4b   :  { %855 = vmatpush3.bf16.msra.mxu0 %v918_v58 }
  0xb6   :  { %v101_v59 = vpop.xlane.xlu0 %100 }
  0xb7   :  { %v102_v60 = vsel %vm96_vm0, %v101_v59, 0.0 }
  0xb8   :  { %v103_v61 = vrot.slane %v102_v60, 4  ;;  %v142_v62 = vpop.xlane.xlu1 %141 }
  0xb9   :  { %v143_v63 = vsel %vm96_vm0, %v142_v62, 0.0  ;;  %v346_v62 = vstv %s774_s25 }
  0xba   :  { %v104_v0 = vadd.f32 %v103_v61, %v102_v60  ;;  %v144_v1 = vrot.slane %v143_v63, 4 }
  0xbc   :  { %v105_v2 = vrot.slane %v104_v0, 2  ;;  %v145_v3 = vadd.f32 %v144_v1, %v143_v63 }
  0xbd   :  { %v285_v4 = vpop.xlane.xlu0 %284 }
  0xbe   :  { %v106_v5 = vadd.f32 %v105_v2, %v104_v0  ;;  %v146_v6 = vrot.slane %v145_v3, 2  ;;  %v286_v8 = vsel %vm96_vm0, %v285_v4, 0.0 }
  0xbf   :  { %v287_v9 = vrot.slane %v286_v8, 4  ;;  %v326_v10 = vpop.xlane.xlu1 %325 }
  0xc0   :  { %v107_v11 = vrot.slane %v106_v5, 1  ;;  %v147_v12 = vadd.f32 %v146_v6, %v145_v3  ;;  %v327_v13 = vsel %vm96_vm0, %v326_v10, 0.0 }
  0xc1   :  { %v288_v14 = vadd.f32 %v287_v9, %v286_v8  ;;  %v328_v15 = vrot.slane %v327_v13, 4 }
  0xc2   :  { %v108_v16 = vadd.f32 %v107_v11, %v106_v5  ;;  %v148_v17 = vrot.slane %v147_v12, 1 }
  0xc3   :  { %v289_v18 = vrot.slane %v288_v14, 2  ;;  %v329_v19 = vadd.f32 %v328_v15, %v327_v13 }
  0xc4   :  { %v150_v20 = vmul.f32 0.001953125, %v108_v16  ;;  %v149_v21 = vadd.f32 %v148_v17, %v147_v12 }
  0xc5   :  { %v290_v22 = vadd.f32 %v289_v18, %v288_v14  ;;  %v330_v23 = vrot.slane %v329_v19, 2 }
  0xc6   :  { %v152_v24 = vmul.f32 %v150_v20, %v150_v20  ;;  %v151_v25 = vmul.f32 0.001953125, %v149_v21 }
  0xc7   :  { %v291_v26 = vrot.slane %v290_v22, 1  ;;  %v331_v27 = vadd.f32 %v330_v23, %v329_v19 }
  0xc8   :  { %v153_v28 = vsub.f32 %v151_v25, %v152_v24 }
  0xc9   :  { %v292_v29 = vadd.f32 %v291_v26, %v290_v22  ;;  %v332_v30 = vrot.slane %v331_v27, 1 }
  0xca   :  { %v154_v31 = vmax.f32 %v153_v28, 0.0 }
  0xcb   :  { %v334_v32 = vmul.f32 0.001953125, %v292_v29  ;;  %v333_v33 = vadd.f32 %v332_v30, %v331_v27 }
  0xcc   :  { %v156_v36 = vadd.f32 1e-05, %v154_v31 }
  0xcd   :  { %v336_v37 = vmul.f32 %v334_v32, %v334_v32  ;;  %v335_v38 = vmul.f32 0.001953125, %v333_v33 }
  0xce   :  { %919 = vrsqrt.f32 %v156_v36 }
  0xcf   :  { %v337_v39 = vsub.f32 %v335_v38, %v336_v37 }
  0xd1   :  { %v338_v40 = vmax.f32 %v337_v39, 0.0 }
  0xd3   :  { %v340_v41 = vadd.f32 1e-05, %v338_v40 }
  0xd5   :  { %921 = vrsqrt.f32 %v340_v41 }
  0xd8   :  { %v920_v43 = vpop.eup %919 }
  0xd9   :  { %v159_v44 = vmul.f32 %v920_v43, %v158_v42 }
  0xdb   :  { %v161_v46 = vmul.f32 %v159_v44, %v150_v20  ;;  %v164_v48 = vmul.f32 %v159_v44, %v1032_v34  ;;  %v165_v49 = vmul.f32 %v159_v44, %v1034_v35 }
  0xdd   :  { %v163_v47 = vsub.f32 %v162_v45, %v161_v46 }
  0xdf   :  { %v922_v51 = vpop.eup %921  ;;  %v166_v52 = vadd.f32 %v164_v48, %v163_v47  ;;  %v167_v53 = vadd.f32 %v165_v49, %v163_v47 }
  0xe0   :  { %v343_v58 = vmul.f32 %v922_v51, %v342_v50 }
  0xe1   :  { %vm168_vm1 = vcmp.gt.f32.partialorder %v166_v52, 0.0  ;;  %vm169_vm2 = vcmp.gt.f32.partialorder %v167_v53, 0.0  ;;  %v170_v59 = vmul.f32 0.01, %v166_v52  ;;  %v171_v60 = vmul.f32 0.01, %v167_v53 }
  0xe2   :  { %v345_v61 = vmul.f32 %v343_v58, %v334_v32  ;;  %v348_v4 = vmul.f32 %v343_v58, %v1042_v56  ;;  %v349_v5 = vmul.f32 %v343_v58, %v1044_v57 }
  0xe3   :  { %v172_v63 = vsel %vm168_vm1, %v166_v52, %v170_v59  ;;  %v173_v0 = vsel %vm169_vm2, %v167_v53, %v171_v60 }
  0xe4   :  { %v179_v34 = vrot.slane %v172_v63, %v178_v54  ;;  %v183_v1 = vrot.slane %v172_v63, %v182_v55  ;;  %v187_v35 = vrot.slane %v173_v0, %v178_v54  ;;  %v191_v2 = vrot.slane %v173_v0, %v182_v55 }
  0xe5   :  { %v347_v3 = vsub.f32 %v346_v62, %v345_v61 }
  0xe6   :  { %v196_v6 = vpack.c.bf16 %v179_v34, %v179_v34  ;;  %v197_v7 = vpack.c.bf16 %v183_v1, %v183_v1  ;;  %v198_v8 = vpack.c.bf16 %v187_v35, %v187_v35  ;;  %v199_v9 = vpack.c.bf16 %v191_v2, %v191_v2 }
  0xe7   :  { %v350_v10 = vadd.f32 %v348_v4, %v347_v3  ;;  %v351_v11 = vadd.f32 %v349_v5, %v347_v3 }
  0xe8   :  { %v577_v12 = vunpack.c.l.b16 %v199_v9  ;;  %v576_v13 = vunpack.c.l.b16 %v198_v8  ;;  %v575_v16 = vunpack.c.l.b16 %v197_v7  ;;  %v574_v18 = vunpack.c.l.b16 %v196_v6 }
  0xe9   :  { %vm352_vm4 = vcmp.gt.f32.partialorder %v350_v10, 0.0  ;;  %vm353_vm5 = vcmp.gt.f32.partialorder %v351_v11, 0.0  ;;  %v354_v14 = vmul.f32 0.01, %v350_v10  ;;  %v355_v15 = vmul.f32 0.01, %v351_v11 }
  0xea   :  { %v580_v17 = vrot.slane %v577_v12, 7  ;;  %v578_v19 = vrot.slane %v576_v13, 7 }
  0xeb   :  { %v356_v56 = vsel %vm352_vm4, %v350_v10, %v354_v14  ;;  %v357_v20 = vsel %vm353_vm5, %v351_v11, %v355_v15 }
  0xec   :  { %v581_v57 = vsel %vm426_vm3, %v580_v17, %v575_v16  ;;  %v579_v21 = vsel %vm426_vm3, %v578_v19, %v574_v18  ;;  %v363_v22 = vrot.slane %v356_v56, %v178_v54  ;;  %v367_v23 = vrot.slane %v356_v56, %v182_v55 }
  0xed   :  { %v583_v24 = vpack.c.b16 %v581_v57, %v581_v57  ;;  %v582_v25 = vpack.c.b16 %v579_v21, %v579_v21  ;;  %v371_v26 = vrot.slane %v357_v20, %v178_v54  ;;  %v375_v27 = vrot.slane %v357_v20, %v182_v55  ;;  %v839_v54 = vld [vmem:[%s1190_s3] ss:$0 sm:$0xff]  ;;  %s939_s3 = scalar_lea.vmem %s749_s29, 32 }
  0xee   :  { %v380_v28 = vpack.c.bf16 %v363_v22, %v363_v22  ;;  %v381_v29 = vpack.c.bf16 %v367_v23, %v367_v23  ;;  %p940_p5 = scmp.ne.s32.totalorder %s749_s29, %s939_s3  ;;  %p945_p7 = scmp.lt.s32.totalorder %s939_s3, %s939_s3 }
  0xef   :  { %714 = vmatprep.mubr.bf16.mxu1 %v583_v24  ;;  %v382_v30 = vpack.c.bf16 %v371_v26, %v371_v26  ;;  %v383_v31 = vpack.c.bf16 %v375_v27, %v375_v27 }
  0xf0   :  { %715 = vmatmul.mubr.bf16.vlgmr.msra.gmra.mrb[0].mxu1 %v582_v25  ;;  %v422_v36 = vunpack.c.l.b16 %v381_v29  ;;  %v421_v38 = vunpack.c.l.b16 %v380_v28  ;;  %p946_p8 = por %p945_p7, %p944_p6 }
  0xf1   :  { %v424_v32 = vunpack.c.l.b16 %v383_v31  ;;  %v423_v33 = vunpack.c.l.b16 %v382_v30 }
  0xf2   :  { %p947_p9 = pnand %p946_p8, %p940_p5 }
  0xf3   :  { %v428_v37 = vrot.slane %v424_v32, 7  ;;  %v425_v39 = vrot.slane %v423_v33, 7 }
  0xf5   :  { %v429_v40 = vsel %vm426_vm3, %v428_v37, %v422_v36  ;;  %v427_v41 = vsel %vm426_vm3, %v425_v39, %v421_v38 }
  0xf6   :  { %v431_v42 = vpack.c.b16 %v429_v40, %v429_v40  ;;  %v430_v43 = vpack.c.b16 %v427_v41, %v427_v41 }
  0xf8   :  { %562 = vmatprep.mubr.bf16.mxu0 %v431_v42 }
  0xf9   :  { %563 = vmatmul.mubr.bf16.vlgmr.msra.gmra.mrb[0].mxu0 %v430_v43 }
 0x1c3   :  { %v878_v44 = vpop.f32.mrb[0].mxu1 }
 0x1c4   :  { %v879_v45 = vpop.f32.mrb[1].mxu1 }
 0x1c5   :  { %v880_v46 = vadd.f32 %v879_v45, %v878_v44  ;;  %v881_v47 = vpop.f32.mrb[2].mxu1 }
 0x1c6   :  { %v882_v48 = vpop.f32.mrb[3].mxu1 }
 0x1cc   :  { %v856_v49 = vpop.f32.mrb[0].mxu0 }
 0x1cd   :  { %v857_v50 = vpop.f32.mrb[1].mxu0 }
 0x1ce   :  { %v858_v51 = vadd.f32 %v857_v50, %v856_v49  ;;  %v859_v52 = vpop.f32.mrb[2].mxu0 }
 0x1cf   :  { %v860_v53 = vpop.f32.mrb[3].mxu0 }
 0x1d0   :  { %v717_v55 = vadd.f32 %v880_v46, %v858_v51 }
 0x1d2   :  { %v729_v58 = vadd.f32 %v839_v54, %v717_v55 }
 0x1d4   :  { %v730_v59 = vsel %vm96_vm0, %v729_v58, -inf }
 0x1d5   :  { %731 = vmax.xlane.f32.xlu0 %v730_v59 }
 0x262   :  { %v732_v60 = vpop.xlane.xlu0 %731 }
 0x263   :  { %v733_v61 = vsub.f32 %v729_v58, %v732_v60 }
 0x265   :  { %v734_v62 = vmul.f32 1.442695, %v733_v61 }
 0x267   :  { %923 = vpow2.f32 %v734_v62 }
 0x271   :  { %v924_v63 = vpop.eup %923 }
 0x272   :  { %v736_v0 = vsel %vm96_vm0, %v924_v63, 0.0 }
 0x273   :  { %737 = vadd.xlane.f32.xlu1 %v736_v0 }
 0x300   :  { %v738_v34 = vpop.xlane.xlu1 %737 }
 0x301   :  { %925 = vrcp.f32 %v738_v34 }
 0x30b   :  { %v926_v1 = vpop.eup %925 }
 0x30c   :  { %v740_v35 = vmul.f32 %v926_v1, %v924_v63 }
 0x30e   :  { %741 = vst [vmem:[#allocation5] sm:$0x3] %v740_v35 }
 0x30f   :  { %950 = shalt.err (!%p947_p9)
}
 0x310   :  { %s951_s6 = scalar_lea.hbm %s1191_s4, 32 }
 0x311   :  { %p952_p10 = scmp.ne.s32.totalorder %s1191_s4, %s951_s6  ;;  %p955_p11 = scmp.lt.u32.totalorder %s951_s6, %s1191_s4 }
 0x313   :  { %p957_p12 = pnand %p955_p11, %p952_p10 }
 0x315   :  { %960 = shalt.err (!%p957_p12)
}
 0x316   :  { %751 = dma.vmem_to_hbm [thread:$0]  %s749_s29, 32, %s1191_s4, [#allocation3]  }
 0x317   :  { %963 = dma.done.wait [#allocation3], 32  }
 0x318   :  { %964 = vsyncadd [#allocation3], 4294967264 }
 0x319   :  { %755 = vsyncpa [#allocation3], 1 }
 0x31a   :  { %756 = vsyncpa [#allocation4], 1 }

</bundles_post_ra>
